<compile_context>
chip_gen: v7x
topology: tpu7x:2x2x1
jax: 0.10.0
libtpu: 0.0.40
codegen_flags: <defaults>
</compile_context>

<pallas_src>
import functools

import jax
import jax.numpy as jnp
from jax.experimental import pallas as pl
from jax.experimental.pallas import tpu as pltpu


def mlp_kernel(x_ref, w1_ref, b1_ref, w2_ref, b2_ref, o_ref):
    # ---- Layer 1 on the VPU (K = F_in is tiny: avoid an MXU round trip) ----
    # h[b, j] = sum_k x[b, k] * w1[k, j]   (F_in terms, unrolled at trace time)
    f_in = x_ref.shape[1]
    h = x_ref[:, 0:1] * w1_ref[0:1, :]                  # (TB, 1) * (1, Hp) -> (TB, Hp)
    for k in range(1, f_in):
        h = h + x_ref[:, k:k + 1] * w1_ref[k:k + 1, :]
    h = h + b1_ref[...]                                 # bias broadcast (1, Hp), once per body
    h = jnp.maximum(h, 0.0)                             # ReLU

    # ---- Layer 2 on the MXU: (TB, Hp) @ (Hp, Fp), lane-dense output ----
    y = jnp.dot(h, w2_ref[...], preferred_element_type=jnp.float32)
    y = y + b2_ref[...]
    o_ref[...] = y.astype(o_ref.dtype)                  # full-lane unmasked store


def _round_up(n, m):
    return ((n + m - 1) // m) * m


@functools.partial(jax.jit, static_argnames=("block_batch",))
def mlp_forward(x, w1, b1, w2, b2, *, block_batch=512):
    """x: (B, F_in) f32; w1: (F_in, H); b1: (1, H); w2: (H, F_out); b2: (1, F_out)."""
    B, F_in = x.shape
    H = w1.shape[1]
    F_out = w2.shape[1]

    # Lane-dense padding of hidden / output dims to multiples of 128.
    H_pad = _round_up(max(H, 128), 128)
    F_out_pad = _round_up(max(F_out, 128), 128)

    # Batch tile: multiple of 8 (sublane), up to `block_batch` rows; pad batch so
    # every grid step works on a full tile.
    TB = min(block_batch, _round_up(B, 8))
    TB = _round_up(TB, 8)
    B_pad = _round_up(B, TB)

    # Zero-padding keeps results exact: padded hidden units get 0 weight + 0 bias
    # (-> 0 after ReLU), padded output lanes get 0 and are sliced off below.
    x_p = jnp.pad(x.astype(jnp.float32), ((0, B_pad - B), (0, 0)))
    w1_p = jnp.pad(w1.astype(jnp.float32), ((0, 0), (0, H_pad - H)))
    b1_p = jnp.pad(b1.astype(jnp.float32), ((0, 0), (0, H_pad - H)))
    w2_p = jnp.pad(w2.astype(jnp.float32), ((0, H_pad - H), (0, F_out_pad - F_out)))
    b2_p = jnp.pad(b2.astype(jnp.float32), ((0, 0), (0, F_out_pad - F_out)))

    grid = (B_pad // TB,)

    out_padded = pl.pallas_call(
        mlp_kernel,
        out_shape=jax.ShapeDtypeStruct((B_pad, F_out_pad), jnp.float32),
        grid_spec=pltpu.PrefetchScalarGridSpec(
            num_scalar_prefetch=0,
            grid=grid,
            in_specs=[
                # x tile strides over batch.
                pl.BlockSpec((TB, F_in), lambda i: (i, 0)),
                # Weights / biases: constant index_map -> VMEM-resident across steps.
                pl.BlockSpec((F_in, H_pad), lambda i: (0, 0)),
                pl.BlockSpec((1, H_pad), lambda i: (0, 0)),
                pl.BlockSpec((H_pad, F_out_pad), lambda i: (0, 0)),
                pl.BlockSpec((1, F_out_pad), lambda i: (0, 0)),
            ],
            out_specs=pl.BlockSpec((TB, F_out_pad), lambda i: (i, 0)),
        ),
        compiler_params=pltpu.CompilerParams(
            # Batch axis is embarrassingly parallel: lets v7x shard across both TCs.
            dimension_semantics=("parallel",),
        ),
    )(x_p, w1_p, b1_p, w2_p, b2_p)

    return out_padded[:B, :F_out]


def init_params(key, features_in=2, hidden=100, features_out=3):
    """Deterministic init mimicking PyTorch nn.Linear default (U[-1/sqrt(fan_in), 1/sqrt(fan_in)])."""
    k1, k2, k3, k4 = jax.random.split(key, 4)
    bound1 = 1.0 / jnp.sqrt(features_in)
    bound2 = 1.0 / jnp.sqrt(hidden)
    w1 = jax.random.uniform(k1, (features_in, hidden), jnp.float32, -bound1, bound1)
    b1 = jax.random.uniform(k2, (1, hidden), jnp.float32, -bound1, bound1)
    w2 = jax.random.uniform(k3, (hidden, features_out), jnp.float32, -bound2, bound2)
    b2 = jax.random.uniform(k4, (1, features_out), jnp.float32, -bound2, bound2)
    return w1, b1, w2, b2


if __name__ == "__main__":
    key = jax.random.PRNGKey(0)
    k_x, k_p = jax.random.split(key)

    batch, features_in, hidden, features_out = 8, 2, 100, 3
    x = jax.random.normal(k_x, (batch, features_in), dtype=jnp.float32)
    w1, b1, w2, b2 = init_params(k_p, features_in, hidden, features_out)

    out = mlp_forward(x, w1, b1, w2, b2)
    out = jax.block_until_ready(out)

    # Pure-JAX reference check.
    ref = jnp.maximum(x @ w1 + b1, 0.0) @ w2 + b2
    assert out.shape == (batch, features_out)
    assert jnp.allclose(out, ref, atol=1e-5, rtol=1e-5)

    print("KERNEL_OK")
</pallas_src>

<mosaic_0001>
module attributes {stable_mosaic.version = 11 : i64} {
  func.func @mlp_kernel(%arg0: i32, %arg1: memref<8x2xf32, #tpu.memory_space<vmem>>, %arg2: memref<2x128xf32, #tpu.memory_space<vmem>>, %arg3: memref<1x128xf32, #tpu.memory_space<vmem>>, %arg4: memref<128x128xf32, #tpu.memory_space<vmem>>, %arg5: memref<1x128xf32, #tpu.memory_space<vmem>>, %arg6: memref<8x128xf32, #tpu.memory_space<vmem>>) attributes {dimension_semantics = [#tpu.dimension_semantics<parallel>], iteration_bounds = array<i64: 1>, scalar_prefetch = 0 : i64, scratch_operands = 0 : i64, tpu.core_type = #tpu.core_type<tc>, window_params = [{transform_indices = @transform_0, window_bounds = array<i64: 8, 2>}, {pipeline_mode = #tpu.pipeline_mode<synchronous>, transform_indices = @transform_1, window_bounds = array<i64: 2, 128>}, {pipeline_mode = #tpu.pipeline_mode<synchronous>, transform_indices = @transform_2, window_bounds = array<i64: 1, 128>}, {pipeline_mode = #tpu.pipeline_mode<synchronous>, transform_indices = @transform_3, window_bounds = array<i64: 128, 128>}, {pipeline_mode = #tpu.pipeline_mode<synchronous>, transform_indices = @transform_4, window_bounds = array<i64: 1, 128>}, {transform_indices = @transform_5, window_bounds = array<i64: 8, 128>}]} {
    %c0 = arith.constant 0 : index
    %c0_0 = arith.constant 0 : index
    %0 = vector.load %arg1[%c0, %c0_0] : memref<8x2xf32, #tpu.memory_space<vmem>>, vector<8x1xf32>
    %c0_1 = arith.constant 0 : index
    %c0_2 = arith.constant 0 : index
    %1 = vector.load %arg2[%c0_1, %c0_2] : memref<2x128xf32, #tpu.memory_space<vmem>>, vector<1x128xf32>
    %2 = vector.broadcast %0 : vector<8x1xf32> to vector<8x128xf32>
    %3 = vector.broadcast %1 : vector<1x128xf32> to vector<8x128xf32>
    %4 = arith.mulf %2, %3 : vector<8x128xf32>
    %c0_3 = arith.constant 0 : index
    %c1 = arith.constant 1 : index
    %5 = vector.load %arg1[%c0_3, %c1] : memref<8x2xf32, #tpu.memory_space<vmem>>, vector<8x1xf32>
    %c1_4 = arith.constant 1 : index
    %c0_5 = arith.constant 0 : index
    %6 = vector.load %arg2[%c1_4, %c0_5] : memref<2x128xf32, #tpu.memory_space<vmem>>, vector<1x128xf32>
    %7 = vector.broadcast %5 : vector<8x1xf32> to vector<8x128xf32>
    %8 = vector.broadcast %6 : vector<1x128xf32> to vector<8x128xf32>
    %9 = arith.mulf %7, %8 : vector<8x128xf32>
    %10 = arith.addf %4, %9 : vector<8x128xf32>
    %c0_6 = arith.constant 0 : index
    %c0_7 = arith.constant 0 : index
    %11 = vector.load %arg3[%c0_6, %c0_7] : memref<1x128xf32, #tpu.memory_space<vmem>>, vector<1x128xf32>
    %12 = vector.broadcast %11 : vector<1x128xf32> to vector<8x128xf32>
    %13 = arith.addf %10, %12 : vector<8x128xf32>
    %cst = arith.constant 0.000000e+00 : f32
    %14 = vector.broadcast %cst : f32 to vector<8x128xf32>
    %15 = arith.maximumf %13, %14 : vector<8x128xf32>
    %c0_8 = arith.constant 0 : index
    %c0_9 = arith.constant 0 : index
    %16 = vector.load %arg4[%c0_8, %c0_9] : memref<128x128xf32, #tpu.memory_space<vmem>>, vector<128x128xf32>
    %cst_10 = arith.constant dense<0.000000e+00> : vector<8x128xf32>
    %17 = tpu.matmul %15, %16, %cst_10 {dimension_numbers = #tpu.dot_dimension_numbers<[1], [0], [0], [1], [0, 0, 1, 1], [], []>} : vector<8x128xf32>, vector<128x128xf32>, vector<8x128xf32> -> vector<8x128xf32>
    %c0_11 = arith.constant 0 : index
    %c0_12 = arith.constant 0 : index
    %18 = vector.load %arg5[%c0_11, %c0_12] : memref<1x128xf32, #tpu.memory_space<vmem>>, vector<1x128xf32>
    %19 = vector.broadcast %18 : vector<1x128xf32> to vector<8x128xf32>
    %20 = arith.addf %17, %19 : vector<8x128xf32>
    %c0_13 = arith.constant 0 : index
    %c0_14 = arith.constant 0 : index
    %21 = vector.load %arg6[%c0_13, %c0_14] : memref<8x128xf32, #tpu.memory_space<vmem>>, vector<8x128xf32>
    tpu.vector_store %arg6[%c0_13, %c0_14], %20 {strides = array<i32>} : memref<8x128xf32, #tpu.memory_space<vmem>>, vector<8x128xf32>,
    return
  }
  func.func @transform_0(%arg0: i32) -> (i32, i32) {
    %c0_i32 = arith.constant 0 : i32
    %c0_i32_0 = arith.constant 0 : i32
    return %arg0, %c0_i32 : i32, i32
  }
  func.func @transform_1(%arg0: i32) -> (i32, i32) {
    %c0_i32 = arith.constant 0 : i32
    %c0_i32_0 = arith.constant 0 : i32
    %c0_i32_1 = arith.constant 0 : i32
    return %c0_i32, %c0_i32_0 : i32, i32
  }
  func.func @transform_2(%arg0: i32) -> (i32, i32) {
    %c0_i32 = arith.constant 0 : i32
    %c0_i32_0 = arith.constant 0 : i32
    %c0_i32_1 = arith.constant 0 : i32
    return %c0_i32, %c0_i32_0 : i32, i32
  }
  func.func @transform_3(%arg0: i32) -> (i32, i32) {
    %c0_i32 = arith.constant 0 : i32
    %c0_i32_0 = arith.constant 0 : i32
    %c0_i32_1 = arith.constant 0 : i32
    return %c0_i32, %c0_i32_0 : i32, i32
  }
  func.func @transform_4(%arg0: i32) -> (i32, i32) {
    %c0_i32 = arith.constant 0 : i32
    %c0_i32_0 = arith.constant 0 : i32
    %c0_i32_1 = arith.constant 0 : i32
    return %c0_i32, %c0_i32_0 : i32, i32
  }
  func.func @transform_5(%arg0: i32) -> (i32, i32) {
    %c0_i32 = arith.constant 0 : i32
    %c0_i32_0 = arith.constant 0 : i32
    return %arg0, %c0_i32 : i32, i32
  }
}

</mosaic_0001>

<bundles_post_ra>
// kernel: mlp_forward.1
= control target key start
LH: loop header
LB: loop body
LE: loop exit
PB: predicated region body
PF: predicated region fallthrough
CT: control target
= control target key end

     0   :  { %v237_v0 = vmov 0   ;;  %v238_v2 = vmov 0.0|0.0   ;;  %v239_v11 = vmov 1   ;;  %vm240_vm0 = vmmov 0   ;;  %s338_s0 = inlined_call_operand.vmem [shape: f32[8,2], index: 0, kind: input, shape index: {}]   ;;  %s339_s3 = inlined_call_operand.vmem [shape: f32[128,128], index: 3, kind: input, shape index: {}]   ;;  %s340_s1 = inlined_call_operand.vmem [shape: f32[2,128], index: 1, kind: input, shape index: {}]   ;;  %s341_s2 = inlined_call_operand.vmem [shape: f32[1,128], index: 2, kind: input, shape index: {}]   ;;  %s342_s4 = inlined_call_operand.vmem [shape: f32[1,128], index: 4, kind: input, shape index: {}]   ;;  %s343_s5 = inlined_call_operand.vmem [shape: f32[8,128], index: 5, kind: output, shape index: {}]  }
   0x1   :  { %235 = vset.pattern.permute.xlu0 %v237_v0  ;;  %v20_v1 = vld [vmem:[%s338_s0] sm:$0xff]  ;;  %206 = vmatprep.subr.bf16.mxu0 %v238_v2  ;;  %v53_v4 = vld [vmem:[%s339_s3 + $0x8] sm:$0xff]  ;;  %v54_v6 = vld [vmem:[%s339_s3 + $0x10] sm:$0xff]  ;;  %v241_v15 = vmov 0.0  }
   0x2   :  { %v52_v3 = vld [vmem:[%s339_s3] sm:$0xff]  ;;  %24 = vperm.xlu0 %235, %v20_v1   ;;  %v55_v7 = vld [vmem:[%s339_s3 + $0x18] sm:$0xff]  ;;  %v57_v10 = vld [vmem:[%s339_s3 + $0x28] sm:$0xff]  ;;  %203 = vmatprep.mubr.msk.f32.mxu0 %vm240_vm0, %v241_v15 }
   0x3   :  { %v207_v5 = vpack.c.bf16 %v53_v4, %v52_v3  ;;  %v210_v8 = vpack.c.bf16 %v55_v7, %v54_v6  ;;  %v56_v9 = vld [vmem:[%s339_s3 + $0x20] sm:$0xff]  ;;  %v58_v13 = vld [vmem:[%s339_s3 + $0x30] sm:$0xff]  ;;  %v59_v14 = vld [vmem:[%s339_s3 + $0x38] sm:$0xff] }
   0x4   :  { %v213_v12 = vpack.c.bf16 %v57_v10, %v56_v9  ;;  %v216_v16 = vpack.c.bf16 %v59_v14, %v58_v13  ;;  %v60_v17 = vld [vmem:[%s339_s3 + $0x40] sm:$0xff]  ;;  %v61_v18 = vld [vmem:[%s339_s3 + $0x48] sm:$0xff]  ;;  %v62_v20 = vld [vmem:[%s339_s3 + $0x50] sm:$0xff] }
   0x5   :  { %208 = vmatpush3.bf16.msra.mxu0 %v207_v5  ;;  %v219_v19 = vpack.c.bf16 %v61_v18, %v60_v17  ;;  %v63_v21 = vld [vmem:[%s339_s3 + $0x58] sm:$0xff]  ;;  %v64_v23 = vld [vmem:[%s339_s3 + $0x60] sm:$0xff]  ;;  %v65_v24 = vld [vmem:[%s339_s3 + $0x68] sm:$0xff] }
   0x6   :  { %209 = vmatprep.subr.bf16.mxu0 %v238_v2  ;;  %236 = vset.pattern.permute.xlu0 %v239_v11  ;;  %v222_v22 = vpack.c.bf16 %v63_v21, %v62_v20  ;;  %v225_v25 = vpack.c.bf16 %v65_v24, %v64_v23  ;;  %v66_v26 = vld [vmem:[%s339_s3 + $0x70] sm:$0xff]  ;;  %v67_v27 = vld [vmem:[%s339_s3 + $0x78] sm:$0xff]  ;;  %v150_v30 = vld [vmem:[%s340_s1] ss:$0 sm:$0xff] }
   0x7   :  { %34 = vperm.xlu0 %236, %v20_v1   ;;  %v228_v28 = vpack.c.bf16 %v67_v27, %v66_v26  ;;  %v151_v31 = vld [vmem:[%s340_s1 + $0x1] ss:$0 sm:$0xff]  ;;  %v152_v35 = vld [vmem:[%s341_s2] ss:$0 sm:$0xff] }
   0x8   :  { %v153_v39 = vld [vmem:[%s342_s4] ss:$0 sm:$0xff] }
   0x9   :  { %211 = vmatpush3.bf16.msra.mxu0 %v210_v8 }
   0xa   :  { %212 = vmatprep.subr.bf16.mxu0 %v238_v2 }
   0xd   :  { %214 = vmatpush3.bf16.msra.mxu0 %v213_v12 }
   0xe   :  { %215 = vmatprep.subr.bf16.mxu0 %v238_v2 }
  0x11   :  { %217 = vmatpush3.bf16.msra.mxu0 %v216_v16 }
  0x12   :  { %218 = vmatprep.subr.bf16.mxu0 %v238_v2 }
  0x15   :  { %220 = vmatpush3.bf16.msra.mxu0 %v219_v19 }
  0x16   :  { %221 = vmatprep.subr.bf16.mxu0 %v238_v2 }
  0x19   :  { %223 = vmatpush3.bf16.msra.mxu0 %v222_v22 }
  0x1a   :  { %224 = vmatprep.subr.bf16.mxu0 %v238_v2 }
  0x1d   :  { %226 = vmatpush3.bf16.msra.mxu0 %v225_v25 }
  0x1e   :  { %227 = vmatprep.subr.bf16.mxu0 %v238_v2 }
  0x21   :  { %229 = vmatpush3.bf16.msra.mxu0 %v228_v28 }
  0x81   :  { %v25_v29 = vpop.permute.xlu0 %24 }
  0x82   :  { %v31_v33 = vmul.f32 %v150_v30, %v25_v29 }
  0x86   :  { %v35_v32 = vpop.permute.xlu0 %34 }
  0x87   :  { %v41_v34 = vmul.f32 %v151_v31, %v35_v32 }
  0x89   :  { %v42_v36 = vadd.f32 %v41_v34, %v31_v33 }
  0x8b   :  { %v50_v37 = vadd.f32 %v152_v35, %v42_v36 }
  0x8d   :  { %v51_v38 = vmax.f32 %v50_v37, 0.0 }
  0x8f   :  { %204 = vmatmul.mubr.f32.vlgmr.msra.gmra.mrb[0].mxu0 %v51_v38 }
 0x162   :  { %v141_v40 = vpop.f32.mrb[0].mxu0 }
 0x163   :  { %v142_v41 = vadd.f32 %v153_v39, %v141_v40  ;;  %v205_v42 = vpop.f32.mrb[1].mxu0 }
 0x165   :  { %145 = vst [vmem:[%s343_s5] sm:$0xff] %v142_v41 }

</bundles_post_ra>
